<compile_context>
chip_gen: v5e
topology: v5e:2x2
jax: 0.10.0
libtpu: 0.0.40
codegen_flags: <defaults>
</compile_context>

<pallas_src>
import functools
import math

import jax
import jax.numpy as jnp
from jax.experimental import pallas as pl
from jax.experimental.pallas import tpu as pltpu


def _round_up(n, m):
    return ((n + m - 1) // m) * m


# ---------------------------------------------------------------------------
# Fused Pallas kernel: the whole MLP for one batch tile
# ---------------------------------------------------------------------------
def _mlp_kernel(x_ref, *refs, n_layers):
    # refs = [w0, b0, w1, b1, ..., w_{n-1}, b_{n-1}, o_ref]
    o_ref = refs[-1]
    h = x_ref[...].astype(jnp.float32)                 # (TB, D_in) tile
    for i in range(n_layers):
        w = refs[2 * i][...]                           # (D_in_i, D_out_i) bf16
        b = refs[2 * i + 1][...].astype(jnp.float32)   # (1, D_out_i)
        # bf16 x bf16 -> f32 accumulation on the MXU.
        y = jnp.dot(h.astype(w.dtype), w, preferred_element_type=jnp.float32)
        y = y + b                                      # broadcast over batch
        if i < n_layers - 1:
            h = jnp.where(y >= 0.0, y, 0.2 * y)        # LeakyReLU(0.2), f32 VPU
        else:
            h = jnp.tanh(y)                            # final Tanh, f32 EUP
    o_ref[...] = h.astype(o_ref.dtype)


# ---------------------------------------------------------------------------
# Parameters
# ---------------------------------------------------------------------------
def init_params(key, layer_sz, weight_dtype=jnp.bfloat16):
    """Init matching PyTorch nn.Linear default (uniform +-1/sqrt(n_in)).

    Weights are returned as (D_in, D_out) and cast to `weight_dtype` (bf16 by
    default: native MXU path, half the weight DMA). Biases stay f32.
    """
    params = []
    for i in range(len(layer_sz) - 1):
        n_in, n_out = layer_sz[i], layer_sz[i + 1]
        key, kw, kb = jax.random.split(key, 3)
        bound = 1.0 / math.sqrt(n_in)
        w = jax.random.uniform(kw, (n_in, n_out), jnp.float32, -bound, bound)
        b = jax.random.uniform(kb, (n_out,), jnp.float32, -bound, bound)
        params.append((w.astype(weight_dtype), b))
    return params


# ---------------------------------------------------------------------------
# Forward pass: one fused pallas_call over a batch-tiled grid
# ---------------------------------------------------------------------------
def gnet_forward(x, params, image_sz, *, tb_max=256):
    """
    x: (B, layer_sz[0]) f32
    params: list of (W (D_in, D_out) bf16, b (D_out,) f32); all but the last
            layer use LeakyReLU(0.2), the last uses Tanh.
    image_sz: (C, H, W)
    returns: (B, C, H, W) f32
    """
    B, D_in = x.shape
    n_layers = len(params)
    D_out = params[-1][0].shape[1]
    out_dtype = x.dtype

    # Batch tile: multiple of 8 sublanes, capped at tb_max; pad B up to a
    # whole number of tiles (padded rows are sliced off at the end).
    tb = min(tb_max, _round_up(B, 8))
    b_pad = _round_up(B, tb)
    if b_pad != B:
        x = jnp.pad(x, ((0, b_pad - B), (0, 0)))
    num_tiles = b_pad // tb

    # Flat input list + BlockSpecs: x tile walks the batch; weights/biases are
    # full-array blocks with a constant index_map (stay VMEM-resident).
    flat_inputs = [x]
    in_specs = [pl.BlockSpec((tb, D_in), lambda i: (i, 0))]
    for w, b in params:
        din, dout = w.shape
        flat_inputs.append(w)
        in_specs.append(pl.BlockSpec((din, dout), lambda i: (0, 0)))
        flat_inputs.append(b.reshape(1, dout))
        in_specs.append(pl.BlockSpec((1, dout), lambda i: (0, 0)))

    # Roofline hints for XLA's scheduler.
    flops = 2 * b_pad * sum(int(w.shape[0]) * int(w.shape[1]) for w, _ in params)
    bytes_accessed = (
        x.size * x.dtype.itemsize
        + b_pad * D_out * jnp.dtype(out_dtype).itemsize
        + sum(w.size * w.dtype.itemsize + b.size * b.dtype.itemsize
              for w, b in params)
    )
    transcendentals = b_pad * D_out  # final tanh

    # Explicit VMEM budget: double-buffered x/out tiles + resident params,
    # with generous margin; capped to fit v7x's 64 MiB per-TC VMEM.
    est_vmem = 2 * (tb * D_in + tb * D_out) * 4
    est_vmem += 2 * sum(w.size * w.dtype.itemsize + b.size * 4 for w, b in params)
    est_vmem += tb * max(int(w.shape[1]) for w, _ in params) * 4  # live activation
    vmem_limit = int(min(max(4 * est_vmem, 16 * 1024 * 1024), 64 * 1024 * 1024))

    out = pl.pallas_call(
        functools.partial(_mlp_kernel, n_layers=n_layers),
        out_shape=jax.ShapeDtypeStruct((b_pad, D_out), out_dtype),
        grid=(num_tiles,),
        in_specs=in_specs,
        out_specs=pl.BlockSpec((tb, D_out), lambda i: (i, 0)),
        compiler_params=pltpu.CompilerParams(
            dimension_semantics=("parallel",),   # megacore sharding on v7x
            vmem_limit_bytes=vmem_limit,
        ),
        cost_estimate=pl.CostEstimate(
            flops=flops,
            transcendentals=transcendentals,
            bytes_accessed=bytes_accessed,
        ),
    )(*flat_inputs)

    out = out[:B]
    return out.reshape(B, *image_sz)


# ---------------------------------------------------------------------------
# Pure-JAX reference with identical numerics (bf16 operands, f32 accumulate)
# ---------------------------------------------------------------------------
def gnet_forward_ref(x, params, image_sz):
    h = x.astype(jnp.float32)
    n = len(params)
    for i, (w, b) in enumerate(params):
        y = jnp.dot(h.astype(w.dtype), w, preferred_element_type=jnp.float32)
        y = y + b.astype(jnp.float32)
        if i < n - 1:
            h = jnp.where(y >= 0.0, y, 0.2 * y)
        else:
            h = jnp.tanh(y)
    return h.reshape(h.shape[0], *image_sz)


if __name__ == "__main__":
    # Small, shape-consistent config: latent 32 -> 64 -> 128 -> 1*16*16
    layer_sz = [32, 64, 128, 256]
    image_sz = (1, 16, 16)
    assert layer_sz[-1] == image_sz[0] * image_sz[1] * image_sz[2]

    key = jax.random.PRNGKey(0)
    kx, kp, kx2 = jax.random.split(key, 3)
    params = init_params(kp, layer_sz)

    # --- test 1: tiny batch (padded to one 8-row tile, grid=(1,)) ----------
    batch = 2
    x = jax.random.normal(kx, (batch, layer_sz[0]), dtype=jnp.float32)
    out = jax.block_until_ready(gnet_forward(x, params, image_sz))
    ref = gnet_forward_ref(x, params, image_sz)
    assert out.shape == (batch, *image_sz), out.shape
    assert jnp.allclose(out, ref, atol=1e-4, rtol=1e-4), "mismatch vs reference (B=2)"

    # --- test 2: larger batch exercising multi-step grid + padding ---------
    batch2 = 300
    x2 = jax.random.normal(kx2, (batch2, layer_sz[0]), dtype=jnp.float32)
    out2 = jax.block_until_ready(gnet_forward(x2, params, image_sz))
    ref2 = gnet_forward_ref(x2, params, image_sz)
    assert out2.shape == (batch2, *image_sz), out2.shape
    assert jnp.allclose(out2, ref2, atol=1e-4, rtol=1e-4), "mismatch vs reference (B=300)"

    print("KERNEL_OK")
</pallas_src>

<mosaic_0001>
module attributes {stable_mosaic.version = 11 : i64} {
  func.func @_mlp_kernel(%arg0: i32, %arg1: memref<8x32xf32, #tpu.memory_space<vmem>>, %arg2: memref<32x64xbf16, #tpu.memory_space<vmem>>, %arg3: memref<1x64xf32, #tpu.memory_space<vmem>>, %arg4: memref<64x128xbf16, #tpu.memory_space<vmem>>, %arg5: memref<1x128xf32, #tpu.memory_space<vmem>>, %arg6: memref<128x256xbf16, #tpu.memory_space<vmem>>, %arg7: memref<1x256xf32, #tpu.memory_space<vmem>>, %arg8: memref<8x256xf32, #tpu.memory_space<vmem>>) attributes {dimension_semantics = [#tpu.dimension_semantics<parallel>], iteration_bounds = array<i64: 1>, scalar_prefetch = 0 : i64, scratch_operands = 0 : i64, tpu.core_type = #tpu.core_type<tc>, window_params = [{transform_indices = @transform_0, window_bounds = array<i64: 8, 32>}, {pipeline_mode = #tpu.pipeline_mode<synchronous>, transform_indices = @transform_1, window_bounds = array<i64: 32, 64>}, {pipeline_mode = #tpu.pipeline_mode<synchronous>, transform_indices = @transform_2, window_bounds = array<i64: 1, 64>}, {pipeline_mode = #tpu.pipeline_mode<synchronous>, transform_indices = @transform_3, window_bounds = array<i64: 64, 128>}, {pipeline_mode = #tpu.pipeline_mode<synchronous>, transform_indices = @transform_4, window_bounds = array<i64: 1, 128>}, {pipeline_mode = #tpu.pipeline_mode<synchronous>, transform_indices = @transform_5, window_bounds = array<i64: 128, 256>}, {pipeline_mode = #tpu.pipeline_mode<synchronous>, transform_indices = @transform_6, window_bounds = array<i64: 1, 256>}, {transform_indices = @transform_7, window_bounds = array<i64: 8, 256>}]} {
    %c0 = arith.constant 0 : index
    %c0_0 = arith.constant 0 : index
    %0 = vector.load %arg1[%c0, %c0_0] : memref<8x32xf32, #tpu.memory_space<vmem>>, vector<8x32xf32>
    %c0_1 = arith.constant 0 : index
    %c0_2 = arith.constant 0 : index
    %1 = vector.load %arg2[%c0_1, %c0_2] : memref<32x64xbf16, #tpu.memory_space<vmem>>, vector<32x64xbf16>
    %c0_3 = arith.constant 0 : index
    %c0_4 = arith.constant 0 : index
    %2 = vector.load %arg3[%c0_3, %c0_4] : memref<1x64xf32, #tpu.memory_space<vmem>>, vector<1x64xf32>
    %3 = arith.truncf %0 : vector<8x32xf32> to vector<8x32xbf16>
    %cst = arith.constant dense<0.000000e+00> : vector<8x64xf32>
    %4 = tpu.matmul %3, %1, %cst {dimension_numbers = #tpu.dot_dimension_numbers<[1], [0], [0], [1], [0, 0, 1, 1], [], []>} : vector<8x32xbf16>, vector<32x64xbf16>, vector<8x64xf32> -> vector<8x64xf32>
    %5 = vector.broadcast %2 : vector<1x64xf32> to vector<8x64xf32>
    %6 = arith.addf %4, %5 : vector<8x64xf32>
    %cst_5 = arith.constant 0.000000e+00 : f32
    %7 = vector.broadcast %cst_5 : f32 to vector<8x64xf32>
    %8 = arith.cmpf oge, %6, %7 : vector<8x64xf32>
    %cst_6 = arith.constant 2.000000e-01 : f32
    %9 = vector.broadcast %cst_6 : f32 to vector<8x64xf32>
    %10 = arith.mulf %9, %6 : vector<8x64xf32>
    %11 = arith.select %8, %6, %10 : vector<8x64xi1>, vector<8x64xf32>
    %c0_7 = arith.constant 0 : index
    %c0_8 = arith.constant 0 : index
    %12 = vector.load %arg4[%c0_7, %c0_8] : memref<64x128xbf16, #tpu.memory_space<vmem>>, vector<64x128xbf16>
    %c0_9 = arith.constant 0 : index
    %c0_10 = arith.constant 0 : index
    %13 = vector.load %arg5[%c0_9, %c0_10] : memref<1x128xf32, #tpu.memory_space<vmem>>, vector<1x128xf32>
    %14 = arith.truncf %11 : vector<8x64xf32> to vector<8x64xbf16>
    %cst_11 = arith.constant dense<0.000000e+00> : vector<8x128xf32>
    %15 = tpu.matmul %14, %12, %cst_11 {dimension_numbers = #tpu.dot_dimension_numbers<[1], [0], [0], [1], [0, 0, 1, 1], [], []>} : vector<8x64xbf16>, vector<64x128xbf16>, vector<8x128xf32> -> vector<8x128xf32>
    %16 = vector.broadcast %13 : vector<1x128xf32> to vector<8x128xf32>
    %17 = arith.addf %15, %16 : vector<8x128xf32>
    %cst_12 = arith.constant 0.000000e+00 : f32
    %18 = vector.broadcast %cst_12 : f32 to vector<8x128xf32>
    %19 = arith.cmpf oge, %17, %18 : vector<8x128xf32>
    %cst_13 = arith.constant 2.000000e-01 : f32
    %20 = vector.broadcast %cst_13 : f32 to vector<8x128xf32>
    %21 = arith.mulf %20, %17 : vector<8x128xf32>
    %22 = arith.select %19, %17, %21 : vector<8x128xi1>, vector<8x128xf32>
    %c0_14 = arith.constant 0 : index
    %c0_15 = arith.constant 0 : index
    %23 = vector.load %arg6[%c0_14, %c0_15] : memref<128x256xbf16, #tpu.memory_space<vmem>>, vector<128x256xbf16>
    %c0_16 = arith.constant 0 : index
    %c0_17 = arith.constant 0 : index
    %24 = vector.load %arg7[%c0_16, %c0_17] : memref<1x256xf32, #tpu.memory_space<vmem>>, vector<1x256xf32>
    %25 = arith.truncf %22 : vector<8x128xf32> to vector<8x128xbf16>
    %cst_18 = arith.constant dense<0.000000e+00> : vector<8x256xf32>
    %26 = tpu.matmul %25, %23, %cst_18 {dimension_numbers = #tpu.dot_dimension_numbers<[1], [0], [0], [1], [0, 0, 1, 1], [], []>} : vector<8x128xbf16>, vector<128x256xbf16>, vector<8x256xf32> -> vector<8x256xf32>
    %27 = vector.broadcast %24 : vector<1x256xf32> to vector<8x256xf32>
    %28 = arith.addf %26, %27 : vector<8x256xf32>
    %29 = math.tanh %28 : vector<8x256xf32>
    %c0_19 = arith.constant 0 : index
    %c0_20 = arith.constant 0 : index
    %30 = vector.load %arg8[%c0_19, %c0_20] : memref<8x256xf32, #tpu.memory_space<vmem>>, vector<8x256xf32>
    tpu.vector_store %arg8[%c0_19, %c0_20], %29 {strides = array<i32>} : memref<8x256xf32, #tpu.memory_space<vmem>>, vector<8x256xf32>,
    return
  }
  func.func @transform_0(%arg0: i32) -> (i32, i32) {
    %c0_i32 = arith.constant 0 : i32
    %c0_i32_0 = arith.constant 0 : i32
    return %arg0, %c0_i32 : i32, i32
  }
  func.func @transform_1(%arg0: i32) -> (i32, i32) {
    %c0_i32 = arith.constant 0 : i32
    %c0_i32_0 = arith.constant 0 : i32
    %c0_i32_1 = arith.constant 0 : i32
    return %c0_i32, %c0_i32_0 : i32, i32
  }
  func.func @transform_2(%arg0: i32) -> (i32, i32) {
    %c0_i32 = arith.constant 0 : i32
    %c0_i32_0 = arith.constant 0 : i32
    %c0_i32_1 = arith.constant 0 : i32
    return %c0_i32, %c0_i32_0 : i32, i32
  }
  func.func @transform_3(%arg0: i32) -> (i32, i32) {
    %c0_i32 = arith.constant 0 : i32
    %c0_i32_0 = arith.constant 0 : i32
    %c0_i32_1 = arith.constant 0 : i32
    return %c0_i32, %c0_i32_0 : i32, i32
  }
  func.func @transform_4(%arg0: i32) -> (i32, i32) {
    %c0_i32 = arith.constant 0 : i32
    %c0_i32_0 = arith.constant 0 : i32
    %c0_i32_1 = arith.constant 0 : i32
    return %c0_i32, %c0_i32_0 : i32, i32
  }
  func.func @transform_5(%arg0: i32) -> (i32, i32) {
    %c0_i32 = arith.constant 0 : i32
    %c0_i32_0 = arith.constant 0 : i32
    %c0_i32_1 = arith.constant 0 : i32
    return %c0_i32, %c0_i32_0 : i32, i32
  }
  func.func @transform_6(%arg0: i32) -> (i32, i32) {
    %c0_i32 = arith.constant 0 : i32
    %c0_i32_0 = arith.constant 0 : i32
    %c0_i32_1 = arith.constant 0 : i32
    return %c0_i32, %c0_i32_0 : i32, i32
  }
  func.func @transform_7(%arg0: i32) -> (i32, i32) {
    %c0_i32 = arith.constant 0 : i32
    %c0_i32_0 = arith.constant 0 : i32
    return %arg0, %c0_i32 : i32, i32
  }
}

</mosaic_0001>

<bundles_post_ra>
// kernel: tpu_custom_call.1
= control target key start
LH: loop header
LB: loop body
LE: loop exit
PB: predicated region body
PF: predicated region fallthrough
CT: control target
= control target key end

     0   :  { %12 = vsyncpa [#allocation3], 0  ;;  %s707_s0 = inlined_call_operand.hbm [shape: f32[8,32], index: 0, kind: input, shape index: {}]   ;;  %s708_s1 = inlined_call_operand.hbm [shape: bf16[32,64], index: 1, kind: input, shape index: {}]   ;;  %s709_s2 = inlined_call_operand.vmem [shape: f32[1,64], index: 2, kind: input, shape index: {}]   ;;  %s710_s3 = inlined_call_operand.hbm [shape: bf16[64,128], index: 3, kind: input, shape index: {}]   ;;  %s711_s4 = inlined_call_operand.hbm [shape: f32[1,128], index: 4, kind: input, shape index: {}]   ;;  %s712_s5 = inlined_call_operand.hbm [shape: bf16[128,256], index: 5, kind: input, shape index: {}]   ;;  %s713_s6 = inlined_call_operand.vmem [shape: f32[1,256], index: 6, kind: input, shape index: {}]   ;;  %s714_s7 = inlined_call_operand.hbm [shape: f32[8,256], index: 7, kind: output, shape index: {}]  }
   0x1   :  { %13 = vsyncpa [#allocation6], 0 }
   0x2   :  { %14 = vsyncpa [#allocation9], 0  ;;  %s31_s26 = sshll.u32 %s708_s1, 4  ;;  %s32_s26 = int_to_ptr.hbm [resolvable:$true] %s31_s26 }
   0x3   :  { %15 = vsyncpa [#allocation4], 0  ;;  %s633_s27 = smov [#allocation5]   ;;  %s60_s8 = sshll.u32 %s711_s4, 4  ;;  %s61_s8 = int_to_ptr.hbm [resolvable:$true] %s60_s8 }
   0x4   :  { %s33_s28 = sshll.u32 %s633_s27, 4  ;;  %s634_s9 = smov 64   ;;  %s34_s28 = int_to_ptr.vmem [resolvable:$true] %s33_s28 }
   0x5   :  { %s635_s10 = smov 4   ;;  %s636_s11 = smov [#allocation8]  }
   0x6   :  { %39 = dma.hbm_to_vmem [thread:$0]  %s32_s26, 256, %s34_s28, [#allocation6], %s634_s9, %s634_s9, %s635_s10  }
   0x7   :  { %s62_s12 = sshll.u32 %s636_s11, 4  ;;  %s21_s15 = sshll.u32 %s707_s0, 4  ;;  %s63_s12 = int_to_ptr.vmem [resolvable:$true] %s62_s12  ;;  %s22_s15 = int_to_ptr.hbm [resolvable:$true] %s21_s15 }
   0x8   :  { %65 = dma.hbm_to_vmem [thread:$0]  %s61_s8, 16, %s63_s12, [#allocation9]  }
   0x9   :  { %s46_s17 = sshll.u32 %s710_s3, 4  ;;  %s637_s18 = smov [#allocation2]   ;;  %s47_s17 = int_to_ptr.hbm [resolvable:$true] %s46_s17 }
   0xa   :  { %s23_s19 = sshll.u32 %s637_s18, 4  ;;  %s638_s4 = smov [#allocation7]   ;;  %s24_s19 = int_to_ptr.vmem [resolvable:$true] %s23_s19 }
   0xb   :  { %26 = dma.hbm_to_vmem [thread:$0]  %s22_s15, 128, %s24_s19, [#allocation3]  }
   0xc   :  { %s48_s20 = sshll.u32 %s638_s4, 4  ;;  %s70_s23 = sshll.u32 %s712_s5, 4  ;;  %s49_s20 = int_to_ptr.vmem [resolvable:$true] %s48_s20  ;;  %s71_s23 = int_to_ptr.hbm [resolvable:$true] %s70_s23 }
   0xd   :  { %54 = dma.hbm_to_vmem [thread:$0]  %s47_s17, 512, %s49_s20, [#allocation6], %s634_s9, %s634_s9, %s635_s10  }
   0xe   :  { %s639_s0 = smov [#allocation10]   ;;  %s640_s25 = smov 128  }
   0xf   :  { %s72_s24 = sshll.u32 %s639_s0, 4  ;;  %s641_s26 = smov 8   ;;  %s73_s24 = int_to_ptr.vmem [resolvable:$true] %s72_s24 }
  0x10   :  { %78 = dma.hbm_to_vmem [thread:$0]  %s71_s23, 2048, %s73_s24, [#allocation9], %s640_s25, %s640_s25, %s641_s26  }
  0x11   :  { %625 = dma.done.wait [#allocation3], 128  }
  0x12   :  { %626 = vsyncadd [#allocation3], 4294967168 }
  0x13   :  { %627 = dma.done.wait [#allocation6], 768  }
  0x14   :  { %628 = vsyncadd [#allocation6], 4294966528 }
  0x15   :  { %629 = dma.done.wait [#allocation9], 2064  }
  0x16   :  { %630 = vsyncadd [#allocation9], 4294965232  ;;  %v444_v0 = vld [vmem:[#allocation5 + $0x8] sm:$0xff]  ;;  %v443_v2 = vld [vmem:[#allocation5] sm:$0xff]  ;;  %vm124_vm0 = vcmask 261120   ;;  %vm181_vm2 = vcmask 523264  }
  0x17   :  { %v448_v1 = vld [vmem:[#allocation7 + $0x18] sm:$0xff]  ;;  %134 = vmatpush.bf16.msra.mxu0 %v444_v0  ;;  %v102_v3 = vld [vmem:[#allocation2] sm:$0xff]  ;;  %v447_v4 = vld [vmem:[#allocation7 + $0x10] sm:$0xff]  ;;  %s642_s28 = smov [#allocation11]   ;;  %s341_s9 = sshll.u32 %s714_s7, 4  ;;  %s342_s9 = int_to_ptr.hbm [resolvable:$true] %s341_s9 }
  0x18   :  { %189 = vmatpush.bf16.msra.mxu1 %v448_v1  ;;  %v108_v5 = vpack.c.bf16 %v102_v3, %v102_v3  ;;  %v446_v6 = vld [vmem:[#allocation7 + $0x8] sm:$0xff]  ;;  %v445_v7 = vld [vmem:[#allocation7] sm:$0xff]  ;;  %v437_v8 = vld [vmem:[#allocation10 + $0x70] sm:$0xf]  ;;  %s339_s29 = sshll.u32 %s642_s28, 4  ;;  %s340_s29 = int_to_ptr.vmem [resolvable:$true] %s339_s29 }
  0x19   :  { %v464_v9 = vld [vmem:[#allocation10 + $0x74] sm:$0xf0]  ;;  %v463_v10 = vld [vmem:[#allocation10 + $0x74] sm:$0xf]  ;;  %v439_v12 = vld [vmem:[#allocation10 + $0x78] sm:$0xf0] }
  0x1a   :  { %v438_v11 = vor.u32 %v464_v9, %v437_v8  ;;  %v429_v13 = vld [vmem:[#allocation10 + $0x60] sm:$0xf]  ;;  %v462_v14 = vld [vmem:[#allocation10 + $0x64] sm:$0xf0]  ;;  %v442_v15 = vor.u32 %v463_v10, %v439_v12  ;;  %v461_v16 = vld [vmem:[#allocation10 + $0x64] sm:$0xf] }
  0x1b   :  { %135 = vmatpush.bf16.msra.mxu0 %v443_v2  ;;  %v431_v17 = vld [vmem:[#allocation10 + $0x68] sm:$0xf0]  ;;  %v430_v18 = vor.u32 %v462_v14, %v429_v13  ;;  %v421_v20 = vld [vmem:[#allocation10 + $0x50] sm:$0xf]  ;;  %v460_v21 = vld [vmem:[#allocation10 + $0x54] sm:$0xf0] }
  0x1c   :  { %190 = vmatpush.bf16.msra.mxu1 %v447_v4  ;;  %304 = vmatpush.bf16.msra.mxu2 %v438_v11  ;;  %v434_v19 = vor.u32 %v461_v16, %v431_v17  ;;  %v459_v22 = vld [vmem:[#allocation10 + $0x54] sm:$0xf]  ;;  %v423_v23 = vld [vmem:[#allocation10 + $0x58] sm:$0xf0]  ;;  %v422_v24 = vor.u32 %v460_v21, %v421_v20  ;;  %v413_v26 = vld [vmem:[#allocation10 + $0x40] sm:$0xf] }
  0x1d   :  { %317 = vmatpush.bf16.msra.mxu3 %v442_v15  ;;  %v426_v25 = vor.u32 %v459_v22, %v423_v23  ;;  %v458_v27 = vld [vmem:[#allocation10 + $0x44] sm:$0xf0]  ;;  %v457_v28 = vld [vmem:[#allocation10 + $0x44] sm:$0xf]  ;;  %v415_v29 = vld [vmem:[#allocation10 + $0x48] sm:$0xf0] }
  0x1e   :  { %361 = vmatmul.msk.bf16.vlgmr.msra.gmra.mxu0 %vm124_vm0, %v108_v5  ;;  %v414_v30 = vor.u32 %v458_v27, %v413_v26  ;;  %v418_v31 = vor.u32 %v457_v28, %v415_v29  ;;  %v405_v32 = vld [vmem:[#allocation10 + $0x30] sm:$0xf]  ;;  %v456_v33 = vld [vmem:[#allocation10 + $0x34] sm:$0xf0]  ;;  %v455_v34 = vld [vmem:[#allocation10 + $0x34] sm:$0xf] }
  0x1f   :  { %v407_v35 = vld [vmem:[#allocation10 + $0x38] sm:$0xf0]  ;;  %v406_v36 = vor.u32 %v456_v33, %v405_v32  ;;  %v397_v38 = vld [vmem:[#allocation10 + $0x20] sm:$0xf]  ;;  %v454_v39 = vld [vmem:[#allocation10 + $0x24] sm:$0xf0] }
  0x20   :  { %191 = vmatpush.bf16.msra.mxu1 %v446_v6  ;;  %305 = vmatpush.bf16.msra.mxu2 %v430_v18  ;;  %v410_v37 = vor.u32 %v455_v34, %v407_v35  ;;  %v453_v40 = vld [vmem:[#allocation10 + $0x24] sm:$0xf]  ;;  %v399_v41 = vld [vmem:[#allocation10 + $0x28] sm:$0xf0]  ;;  %v398_v42 = vor.u32 %v454_v39, %v397_v38  ;;  %v389_v51 = vld [vmem:[#allocation10 + $0x10] sm:$0xf] }
  0x21   :  { %318 = vmatpush.bf16.msra.mxu3 %v434_v19  ;;  %v402_v43 = vor.u32 %v453_v40, %v399_v41  ;;  %v475_v44 = vld [vmem:[%s709_s2] ss:$0 sm:$0xff]  ;;  %v452_v52 = vld [vmem:[#allocation10 + $0x14] sm:$0xf0]  ;;  %v451_v53 = vld [vmem:[#allocation10 + $0x14] sm:$0xf] }
  0x22   :  { %v390_v54 = vor.u32 %v452_v52, %v389_v51  ;;  %v391_v55 = vld [vmem:[#allocation10 + $0x18] sm:$0xf0]  ;;  %v381_v57 = vld [vmem:[#allocation10] sm:$0xf]  ;;  %v450_v58 = vld [vmem:[#allocation10 + $0x4] sm:$0xf0] }
  0x23   :  { %v394_v56 = vor.u32 %v451_v53, %v391_v55  ;;  %v449_v59 = vld [vmem:[#allocation10 + $0x4] sm:$0xf]  ;;  %v382_v60 = vor.u32 %v450_v58, %v381_v57  ;;  %v383_v61 = vld [vmem:[#allocation10 + $0x8] sm:$0xf0]  ;;  %v476_v63 = vld [vmem:[#allocation8] ss:$0 sm:$0xff] }
  0x24   :  { %192 = vmatpush.bf16.msra.mxu1 %v445_v7  ;;  %306 = vmatpush.bf16.msra.mxu2 %v422_v24  ;;  %v386_v62 = vor.u32 %v449_v59, %v383_v61  ;;  %v217_v6 = vld [vmem:[%s713_s6] sm:$0x3] }
  0x25   :  { %319 = vmatpush.bf16.msra.mxu3 %v426_v25  ;;  %v220_v7 = vperm.slane %v217_v6, 0  ;;  %v221_v8 = vperm.slane %v217_v6, 1 }
  0x28   :  { %307 = vmatpush.bf16.msra.mxu2 %v414_v30 }
  0x29   :  { %320 = vmatpush.bf16.msra.mxu3 %v418_v31 }
  0x2c   :  { %308 = vmatpush.bf16.msra.mxu2 %v406_v36 }
  0x2d   :  { %321 = vmatpush.bf16.msra.mxu3 %v410_v37 }
  0x30   :  { %309 = vmatpush.bf16.msra.mxu2 %v398_v42 }
  0x31   :  { %322 = vmatpush.bf16.msra.mxu3 %v402_v43 }
  0x34   :  { %310 = vmatpush.bf16.msra.mxu2 %v390_v54 }
  0x35   :  { %323 = vmatpush.bf16.msra.mxu3 %v394_v56 }
  0x38   :  { %311 = vmatpush.bf16.msra.mxu2 %v382_v60 }
  0x39   :  { %324 = vmatpush.bf16.msra.mxu3 %v386_v62 }
  0x9b   :  { %v137_v45 = vpop.f32.mrf.mxu0 }
  0x9c   :  { %v138_v46 = vadd.f32 %v475_v44, %v137_v45 }
  0x9e   :  { %vm141_vm1 = vcmp.ge.f32.partialorder %v138_v46, 0.0  ;;  %v142_v47 = vmul.f32 0.2, %v138_v46 }
  0xa0   :  { %v143_v48 = vsel %vm141_vm1, %v138_v46, %v142_v47 }
  0xa1   :  { %v153_v49 = vpack.c.bf16 %v143_v48, %v143_v48 }
  0xa3   :  { %v139_v50 = vpop.f32.mrf.mxu0  ;;  %378 = vmatmul.msk.bf16.vlgmr.msra.gmra.mxu1 %vm181_vm2, %v153_v49 }
 0x120   :  { %v194_v0 = vpop.f32.mrf.mxu1 }
 0x121   :  { %v195_v1 = vadd.f32 %v476_v63, %v194_v0 }
 0x123   :  { %v199_v2 = vmul.f32 0.2, %v195_v1  ;;  %vm198_vm3 = vcmp.ge.f32.partialorder %v195_v1, 0.0 }
 0x125   :  { %v200_v3 = vsel %vm198_vm3, %v195_v1, %v199_v2 }
 0x126   :  { %v218_v4 = vpack.c.bf16 %v200_v3, %v200_v3 }
 0x128   :  { %v196_v5 = vpop.f32.mrf.mxu1  ;;  %312 = vmatmul.bf16.vlgmr.msra.gmra.mxu2 %v218_v4  ;;  %325 = vmatmul.bf16.vlgmr.msra.gmra.mxu3 %v218_v4 }
 0x1ab   :  { %v313_v9 = vpop.f32.mrf.mxu2  ;;  %v326_v10 = vpop.f32.mrf.mxu3 }
 0x1ac   :  { %v314_v11 = vadd.f32 %v313_v9, %v220_v7  ;;  %v327_v12 = vadd.f32 %v326_v10, %v221_v8 }
 0x1ae   :  { %477 = vtanh.f32 %v314_v11 }
 0x1af   :  { %479 = vtanh.f32 %v327_v12 }
 0x1b3   :  { %v315_v13 = vpop.f32.mrf.mxu2  ;;  %v328_v14 = vpop.f32.mrf.mxu3 }
 0x1b4   :  { %v478_v15 = vpop.eup %477 }
 0x1b5   :  { %v480_v16 = vpop.eup %479  ;;  %332 = vst [vmem:[#allocation11] sm:$0xff] %v478_v15 }
 0x1b6   :  { %333 = vst [vmem:[#allocation11 + $0x8] sm:$0xff] %v480_v16 }
 0x1b7   :  { %344 = dma.vmem_to_hbm [thread:$0]  %s340_s29, 256, %s342_s9, [#allocation4]  }
 0x1b8   :  { %631 = dma.done.wait [#allocation4], 256  }
 0x1b9   :  { %632 = vsyncadd [#allocation4], 4294967040 }
 0x1ba   :  { %349 = vsyncpa [#allocation3], 1 }
 0x1bb   :  { %350 = vsyncpa [#allocation6], 1 }
 0x1bc   :  { %351 = vsyncpa [#allocation9], 1 }
 0x1bd   :  { %352 = vsyncpa [#allocation4], 1 }

</bundles_post_ra>
